<compile_context>
chip_gen: v7x
topology: tpu7x:2x2x1
jax: 0.10.0
libtpu: 0.0.40
codegen_flags: <defaults>
</compile_context>

<pallas_src>
import functools

import jax
import jax.numpy as jnp
from jax.experimental import pallas as pl
from jax.experimental.pallas import tpu as pltpu


# ----------------------------- helpers -------------------------------------


def _round_up(x, m):
    return (x + m - 1) // m * m


def _sublane_mult(dtype):
    # f32 -> 8 sublanes per vreg tile, bf16 -> 16, int8/fp8 -> 32.
    return {4: 8, 2: 16, 1: 32}.get(jnp.dtype(dtype).itemsize, 8)


def _padded2d_f32_bytes(rows, cols):
    return _round_up(rows, 8) * _round_up(cols, 128) * 4


def _tpu_budgets():
    """(vmem_capacity_bytes, is_multicore) with conservative fallbacks."""
    cap = 64 << 20          # conservative default: v7x per-core VMEM
    cores = None
    try:
        fn = getattr(pltpu, "get_tpu_info", None)
        if fn is not None:
            info = fn()
            c = getattr(info, "vmem_capacity_bytes", None)
            if c:
                cap = int(c)
            for name in ("num_tensorcores", "tensorcores_per_chip",
                         "num_cores", "cores_per_chip"):
                v = getattr(info, name, None)
                if v:
                    cores = int(v)
                    break
    except Exception:
        pass
    if cores is None:
        cores = 2 if cap <= (64 << 20) else 1   # v7x heuristic (64 MiB, 2 TCs)
    return cap, cores > 1


def _pick_batch_tile(B, bytes_per_image_padded, budget, multicore):
    """Largest divisor of B whose (in+out, double-buffered) slabs fit budget.

    Returns None if even a single image does not fit (two-pass fallback).
    On dual-TC chips prefer an even grid >= 4 (load balance + per-core
    double-buffering); on single-TC chips just take the largest tile.
    """
    fits = [bt for bt in range(1, B + 1)
            if B % bt == 0 and 4 * bt * bytes_per_image_padded <= budget]
    if not fits:
        return None
    if multicore:
        good = [bt for bt in fits if (B // bt) >= 4 and (B // bt) % 2 == 0]
        if good:
            return good[-1]
        good = [bt for bt in fits if (B // bt) % 2 == 0]
        if good:
            return good[-1]
    return fits[-1]


def _pick_hw_tile(HW, c_padded, itemsize, max_block_bytes):
    """Largest multiple-of-128 divisor of HW whose padded block fits."""
    cands = [t for t in range(128, HW + 1, 128) if HW % t == 0]
    if not cands:
        return None
    fitting = [t for t in cands if c_padded * t * itemsize <= max_block_bytes]
    return fitting[-1] if fitting else cands[0]


# ----------------------------- kernels -------------------------------------


def _se_kernel(x_ref, w1t_ref, b1_ref, w2t_ref, b2_ref, o_ref, *, inv_hw):
    """Single-pass SE: pool -> 1x1 conv -> ReLU -> 1x1 conv -> sigmoid -> scale."""
    # AdaptiveAvgPool2d(1): accumulate in f32 WITHOUT materializing an f32 copy.
    pooled = jnp.sum(x_ref[...], axis=2, dtype=jnp.float32) * inv_hw   # (Bt, C)

    # Conv2d(C, C//8, 1) + ReLU (batched matmul over the whole tile).
    h = jnp.dot(pooled, w1t_ref[...], preferred_element_type=jnp.float32)
    h = jnp.maximum(h + b1_ref[...], 0.0)                              # (Bt, C8)

    # Conv2d(C//8, C, 1) + Sigmoid.
    s = jnp.dot(h, w2t_ref[...], preferred_element_type=jnp.float32)
    s = jax.nn.sigmoid(s + b2_ref[...])                                # (Bt, C)

    # x * scale in the INPUT dtype (second VMEM read of x_ref is cheap).
    scale = s.astype(x_ref.dtype)
    o_ref[...] = (x_ref[...] * scale[:, :, None]).astype(o_ref.dtype)


def _pool_scale_kernel(x_ref, w1t_ref, b1_ref, w2t_ref, b2_ref, s_ref, acc_ref,
                       *, inv_hw):
    """Two-pass fallback, pass 1: HW-chunked pooled sum -> scale s per image."""
    h_idx = pl.program_id(1)

    @pl.when(h_idx == 0)
    def _():
        acc_ref[...] = jnp.zeros_like(acc_ref)

    acc_ref[...] += jnp.sum(x_ref[...], axis=2, dtype=jnp.float32)     # (1, C)

    @pl.when(h_idx == pl.num_programs(1) - 1)
    def _():
        pooled = acc_ref[...] * inv_hw
        h = jnp.dot(pooled, w1t_ref[...], preferred_element_type=jnp.float32)
        h = jnp.maximum(h + b1_ref[...], 0.0)
        s = jnp.dot(h, w2t_ref[...], preferred_element_type=jnp.float32)
        s = jax.nn.sigmoid(s + b2_ref[...])                            # (1, C)
        s_ref[...] = s[:, None, :]                                     # (1, 1, C)


def _scale_mul_kernel(s_ref, x_ref, o_ref):
    """Two-pass fallback, pass 2: tiled x * s broadcast multiply."""
    s = s_ref[...][:, 0, :].astype(x_ref.dtype)                        # (1, C)
    o_ref[...] = (x_ref[...] * s[:, :, None]).astype(o_ref.dtype)


# ----------------------------- wrapper --------------------------------------


@functools.partial(jax.jit, static_argnames=("force_two_pass", "max_block_bytes"))
def se_block(x, w1, b1, w2, b2, force_two_pass=False, max_block_bytes=None):
    """x: (B, C, H, W). w1: (C//8, C), b1: (C//8,), w2: (C, C//8), b2: (C,)."""
    B, C, H, W = x.shape
    HW = H * W
    C8 = w1.shape[0]
    elt = x.dtype.itemsize

    # Padded VMEM footprint of one (C, HW) image slab (sublane x lane tiling).
    sub = _sublane_mult(x.dtype)
    c_pad = _round_up(C, sub)
    image_bytes = c_pad * _round_up(HW, 128) * elt

    vmem_cap, multicore = _tpu_budgets()
    pipeline_budget = vmem_cap * 9 // 16          # in+out double buffers
    vmem_limit_cap = vmem_cap * 7 // 8            # leave compiler headroom

    # Channels-first, no transpose: (B, C, H, W) -> (B, C, HW) is a free reshape.
    x2 = x.reshape(B, C, HW)

    # Pre-transposed weights; biases as (1, N) rows.  All in f32.
    w1t = jnp.transpose(w1).astype(jnp.float32)   # (C, C8)
    w2t = jnp.transpose(w2).astype(jnp.float32)   # (C8, C)
    b1r = b1.reshape(1, C8).astype(jnp.float32)
    b2r = b2.reshape(1, C).astype(jnp.float32)

    # Padded, double-buffered weight bytes (grid-invariant inputs).
    w_bytes = 2 * (_padded2d_f32_bytes(C, C8) + _padded2d_f32_bytes(C8, C)
                   + _padded2d_f32_bytes(1, C8) + _padded2d_f32_bytes(1, C))

    bt = None if force_two_pass else _pick_batch_tile(
        B, image_bytes, pipeline_budget, multicore)

    if bt is not None:
        # ----------------- single-pass path (fits pipeline budget) ----------
        grid = (B // bt,)
        pipeline_bytes = 4 * bt * image_bytes
        vmem_limit = int(min(max(pipeline_bytes + w_bytes + (4 << 20), 16 << 20),
                             vmem_limit_cap))
        cost = pl.CostEstimate(
            flops=int(2 * B * C * HW + 4 * B * C * C8),
            transcendentals=int(B * C),
            bytes_accessed=int(2 * B * C * HW * elt + 4 * (2 * C * C8 + C + C8)),
        )
        out = pl.pallas_call(
            functools.partial(_se_kernel, inv_hw=1.0 / HW),
            out_shape=jax.ShapeDtypeStruct((B, C, HW), x.dtype),
            grid_spec=pltpu.PrefetchScalarGridSpec(
                num_scalar_prefetch=0,
                grid=grid,
                in_specs=[
                    pl.BlockSpec((bt, C, HW), lambda b: (b, 0, 0)),   # x
                    pl.BlockSpec((C, C8), lambda b: (0, 0)),          # W1^T
                    pl.BlockSpec((1, C8), lambda b: (0, 0)),          # b1
                    pl.BlockSpec((C8, C), lambda b: (0, 0)),          # W2^T
                    pl.BlockSpec((1, C), lambda b: (0, 0)),           # b2
                ],
                out_specs=pl.BlockSpec((bt, C, HW), lambda b: (b, 0, 0)),
            ),
            compiler_params=pltpu.CompilerParams(
                dimension_semantics=("parallel",),
                vmem_limit_bytes=vmem_limit),
            cost_estimate=cost,
        )(x2, w1t, b1r, w2t, b2r)
        return out.reshape(B, C, H, W)

    # ----------------- two-pass fallback (image slab too large) -------------
    blk_budget = (max_block_bytes if max_block_bytes is not None
                  else max(pipeline_budget // 4, 1 << 20))
    thw = _pick_hw_tile(HW, c_pad, elt, blk_budget)
    if thw is None:
        # TODO(synk): chunk along C (sublane dim) when HW has no multiple-of-128
        # divisor; for now degrade to one whole-image block per grid step.
        thw = HW
    nH = HW // thw
    blk_bytes = c_pad * _round_up(thw, 128) * elt

    # Pass 1: pooled sums + conv/ReLU/conv/sigmoid -> s (B, 1, C) f32.
    p1_limit = int(min(max(2 * blk_bytes + w_bytes + (4 << 20), 16 << 20),
                       vmem_limit_cap))
    s_out = pl.pallas_call(
        functools.partial(_pool_scale_kernel, inv_hw=1.0 / HW),
        out_shape=jax.ShapeDtypeStruct((B, 1, C), jnp.float32),
        grid_spec=pltpu.PrefetchScalarGridSpec(
            num_scalar_prefetch=0,
            grid=(B, nH),
            in_specs=[
                pl.BlockSpec((1, C, thw), lambda b, h: (b, 0, h)),    # x chunk
                pl.BlockSpec((C, C8), lambda b, h: (0, 0)),           # W1^T
                pl.BlockSpec((1, C8), lambda b, h: (0, 0)),           # b1
                pl.BlockSpec((C8, C), lambda b, h: (0, 0)),           # W2^T
                pl.BlockSpec((1, C), lambda b, h: (0, 0)),            # b2
            ],
            out_specs=pl.BlockSpec((1, 1, C), lambda b, h: (b, 0, 0)),
            scratch_shapes=[pltpu.VMEM((1, C), jnp.float32)],
        ),
        compiler_params=pltpu.CompilerParams(
            dimension_semantics=("parallel", "arbitrary"),
            vmem_limit_bytes=p1_limit),
        cost_estimate=pl.CostEstimate(
            flops=int(B * C * HW + 4 * B * C * C8),
            transcendentals=int(B * C),
            bytes_accessed=int(B * C * HW * elt + 4 * (2 * C * C8 + C + C8)
                               + 4 * B * C)),
    )(x2, w1t, b1r, w2t, b2r)

    # Pass 2: out = x * s, freely tiled over (batch, HW chunks).
    p2_limit = int(min(max(4 * blk_bytes + (4 << 20), 16 << 20), vmem_limit_cap))
    out = pl.pallas_call(
        _scale_mul_kernel,
        out_shape=jax.ShapeDtypeStruct((B, C, HW), x.dtype),
        grid_spec=pltpu.PrefetchScalarGridSpec(
            num_scalar_prefetch=0,
            grid=(B, nH),
            in_specs=[
                pl.BlockSpec((1, 1, C), lambda b, h: (b, 0, 0)),      # s
                pl.BlockSpec((1, C, thw), lambda b, h: (b, 0, h)),    # x chunk
            ],
            out_specs=pl.BlockSpec((1, C, thw), lambda b, h: (b, 0, h)),
        ),
        compiler_params=pltpu.CompilerParams(
            dimension_semantics=("parallel", "parallel"),
            vmem_limit_bytes=p2_limit),
        cost_estimate=pl.CostEstimate(
            flops=int(B * C * HW),
            transcendentals=0,
            bytes_accessed=int(2 * B * C * HW * elt + 4 * B * C)),
    )(s_out, x2)
    return out.reshape(B, C, H, W)


def se_block_ref(x, w1, b1, w2, b2):
    """Pure-JAX reference identical to the PyTorch module semantics."""
    pooled = jnp.mean(x, axis=(2, 3))                     # (B, C)
    h = jnp.maximum(pooled @ w1.T + b1, 0.0)              # (B, C//8)
    s = jax.nn.sigmoid(h @ w2.T + b2)                     # (B, C)
    return x * s[:, :, None, None]


if __name__ == "__main__":
    B, C, H, W = 2, 32, 16, 16
    C8 = C // 8

    key = jax.random.PRNGKey(0)
    kx, k1, k2, k3, k4 = jax.random.split(key, 5)

    x = jax.random.normal(kx, (B, C, H, W), dtype=jnp.float32)

    # Parameter shapes from nn.Conv2d(C, C//8, 1) etc. with 1x1 spatial squeezed.
    w1 = jax.random.normal(k1, (C8, C), dtype=jnp.float32) * 0.1   # conv1 weight
    b1 = jax.random.normal(k2, (C8,), dtype=jnp.float32) * 0.1     # conv1 bias
    w2 = jax.random.normal(k3, (C, C8), dtype=jnp.float32) * 0.1   # conv2 weight
    b2 = jax.random.normal(k4, (C,), dtype=jnp.float32) * 0.1      # conv2 bias

    ref = se_block_ref(x, w1, b1, w2, b2)
    atol = 1e-5 if x.dtype == jnp.float32 else 2e-2       # dtype-aware tolerance

    # Single-pass (main) path.
    out = jax.block_until_ready(se_block(x, w1, b1, w2, b2))
    assert out.shape == (B, C, H, W)
    assert jnp.allclose(out, ref, atol=atol, rtol=atol), "single-pass mismatch"

    # Two-pass fallback path (forced, with a small chunk so HW splits into 2).
    out2 = jax.block_until_ready(
        se_block(x, w1, b1, w2, b2, force_two_pass=True, max_block_bytes=16 * 1024))
    assert out2.shape == (B, C, H, W)
    assert jnp.allclose(out2, ref, atol=atol, rtol=atol), "two-pass mismatch"

    print("KERNEL_OK")
</pallas_src>

<mosaic_0001>
module attributes {stable_mosaic.version = 11 : i64} {
  func.func @_se_kernel(%arg0: i32, %arg1: memref<1x32x256xf32, #tpu.memory_space<vmem>>, %arg2: memref<32x4xf32, #tpu.memory_space<vmem>>, %arg3: memref<1x4xf32, #tpu.memory_space<vmem>>, %arg4: memref<4x32xf32, #tpu.memory_space<vmem>>, %arg5: memref<1x32xf32, #tpu.memory_space<vmem>>, %arg6: memref<1x32x256xf32, #tpu.memory_space<vmem>>) attributes {dimension_semantics = [#tpu.dimension_semantics<parallel>], iteration_bounds = array<i64: 2>, scalar_prefetch = 0 : i64, scratch_operands = 0 : i64, tpu.core_type = #tpu.core_type<tc>, window_params = [{transform_indices = @transform_0, window_bounds = array<i64: 1, 32, 256>}, {pipeline_mode = #tpu.pipeline_mode<synchronous>, transform_indices = @transform_1, window_bounds = array<i64: 32, 4>}, {pipeline_mode = #tpu.pipeline_mode<synchronous>, transform_indices = @transform_2, window_bounds = array<i64: 1, 4>}, {pipeline_mode = #tpu.pipeline_mode<synchronous>, transform_indices = @transform_3, window_bounds = array<i64: 4, 32>}, {pipeline_mode = #tpu.pipeline_mode<synchronous>, transform_indices = @transform_4, window_bounds = array<i64: 1, 32>}, {transform_indices = @transform_5, window_bounds = array<i64: 1, 32, 256>}]} {
    %c0 = arith.constant 0 : index
    %c0_0 = arith.constant 0 : index
    %c0_1 = arith.constant 0 : index
    %0 = vector.load %arg1[%c0, %c0_0, %c0_1] : memref<1x32x256xf32, #tpu.memory_space<vmem>>, vector<1x32x256xf32>
    %cst = arith.constant dense<0.000000e+00> : vector<1x32xf32>
    %1 = vector.multi_reduction <add>, %0, %cst [2] : vector<1x32x256xf32> to vector<1x32xf32>
    %cst_2 = arith.constant 3.906250e-03 : f32
    %2 = vector.broadcast %cst_2 : f32 to vector<1x32xf32>
    %3 = arith.mulf %1, %2 : vector<1x32xf32>
    %c0_3 = arith.constant 0 : index
    %c0_4 = arith.constant 0 : index
    %4 = vector.load %arg2[%c0_3, %c0_4] : memref<32x4xf32, #tpu.memory_space<vmem>>, vector<32x4xf32>
    %cst_5 = arith.constant dense<0.000000e+00> : vector<1x4xf32>
    %5 = tpu.matmul %3, %4, %cst_5 {dimension_numbers = #tpu.dot_dimension_numbers<[1], [0], [0], [1], [0, 0, 1, 1], [], []>} : vector<1x32xf32>, vector<32x4xf32>, vector<1x4xf32> -> vector<1x4xf32>
    %c0_6 = arith.constant 0 : index
    %c0_7 = arith.constant 0 : index
    %6 = vector.load %arg3[%c0_6, %c0_7] : memref<1x4xf32, #tpu.memory_space<vmem>>, vector<1x4xf32>
    %7 = arith.addf %5, %6 : vector<1x4xf32>
    %cst_8 = arith.constant 0.000000e+00 : f32
    %8 = vector.broadcast %cst_8 : f32 to vector<1x4xf32>
    %9 = arith.maximumf %7, %8 : vector<1x4xf32>
    %c0_9 = arith.constant 0 : index
    %c0_10 = arith.constant 0 : index
    %10 = vector.load %arg4[%c0_9, %c0_10] : memref<4x32xf32, #tpu.memory_space<vmem>>, vector<4x32xf32>
    %cst_11 = arith.constant dense<0.000000e+00> : vector<1x32xf32>
    %11 = tpu.matmul %9, %10, %cst_11 {dimension_numbers = #tpu.dot_dimension_numbers<[1], [0], [0], [1], [0, 0, 1, 1], [], []>} : vector<1x4xf32>, vector<4x32xf32>, vector<1x32xf32> -> vector<1x32xf32>
    %c0_12 = arith.constant 0 : index
    %c0_13 = arith.constant 0 : index
    %12 = vector.load %arg5[%c0_12, %c0_13] : memref<1x32xf32, #tpu.memory_space<vmem>>, vector<1x32xf32>
    %13 = arith.addf %11, %12 : vector<1x32xf32>
    %14 = arith.negf %13 : vector<1x32xf32>
    %15 = math.exp %14 : vector<1x32xf32>
    %cst_14 = arith.constant 1.000000e+00 : f32
    %16 = vector.broadcast %cst_14 : f32 to vector<1x32xf32>
    %17 = arith.addf %16, %15 : vector<1x32xf32>
    %18 = arith.divf %16, %17 : vector<1x32xf32>
    %c0_15 = arith.constant 0 : index
    %c0_16 = arith.constant 0 : index
    %c0_17 = arith.constant 0 : index
    %19 = vector.load %arg1[%c0_15, %c0_16, %c0_17] : memref<1x32x256xf32, #tpu.memory_space<vmem>>, vector<1x32x256xf32>
    %20 = vector.shape_cast %18 : vector<1x32xf32> to vector<1x32x1xf32>
    %21 = vector.broadcast %20 : vector<1x32x1xf32> to vector<1x32x256xf32>
    %22 = arith.mulf %19, %21 : vector<1x32x256xf32>
    %c0_18 = arith.constant 0 : index
    %c0_19 = arith.constant 0 : index
    %c0_20 = arith.constant 0 : index
    %23 = vector.load %arg6[%c0_18, %c0_19, %c0_20] : memref<1x32x256xf32, #tpu.memory_space<vmem>>, vector<1x32x256xf32>
    tpu.vector_store %arg6[%c0_18, %c0_19, %c0_20], %22 {strides = array<i32>} : memref<1x32x256xf32, #tpu.memory_space<vmem>>, vector<1x32x256xf32>,
    return
  }
  func.func @transform_0(%arg0: i32) -> (i32, i32, i32) {
    %c0_i32 = arith.constant 0 : i32
    %c0_i32_0 = arith.constant 0 : i32
    %c0_i32_1 = arith.constant 0 : i32
    return %arg0, %c0_i32, %c0_i32_0 : i32, i32, i32
  }
  func.func @transform_1(%arg0: i32) -> (i32, i32) {
    %c0_i32 = arith.constant 0 : i32
    %c0_i32_0 = arith.constant 0 : i32
    %c0_i32_1 = arith.constant 0 : i32
    return %c0_i32, %c0_i32_0 : i32, i32
  }
  func.func @transform_2(%arg0: i32) -> (i32, i32) {
    %c0_i32 = arith.constant 0 : i32
    %c0_i32_0 = arith.constant 0 : i32
    %c0_i32_1 = arith.constant 0 : i32
    return %c0_i32, %c0_i32_0 : i32, i32
  }
  func.func @transform_3(%arg0: i32) -> (i32, i32) {
    %c0_i32 = arith.constant 0 : i32
    %c0_i32_0 = arith.constant 0 : i32
    %c0_i32_1 = arith.constant 0 : i32
    return %c0_i32, %c0_i32_0 : i32, i32
  }
  func.func @transform_4(%arg0: i32) -> (i32, i32) {
    %c0_i32 = arith.constant 0 : i32
    %c0_i32_0 = arith.constant 0 : i32
    %c0_i32_1 = arith.constant 0 : i32
    return %c0_i32, %c0_i32_0 : i32, i32
  }
  func.func @transform_5(%arg0: i32) -> (i32, i32, i32) {
    %c0_i32 = arith.constant 0 : i32
    %c0_i32_0 = arith.constant 0 : i32
    %c0_i32_1 = arith.constant 0 : i32
    return %arg0, %c0_i32, %c0_i32_0 : i32, i32, i32
  }
}

</mosaic_0001>

<bundles_post_ra>
// kernel: se_block.1
= control target key start
LH: loop header
LB: loop body
LE: loop exit
PB: predicated region body
PF: predicated region fallthrough
CT: control target
= control target key end

     0   :  { %s637_s18 = smov 0   ;;  %s714_s0 = inlined_call_operand.vmem [shape: f32[2,32,256], index: 0, kind: input, shape index: {}]   ;;  %s715_s1 = inlined_call_operand.vmem [shape: f32[32,4], index: 1, kind: input, shape index: {}]   ;;  %s716_s2 = inlined_call_operand.vmem [shape: f32[1,4], index: 2, kind: input, shape index: {}]   ;;  %s717_s3 = inlined_call_operand.vmem [shape: f32[4,32], index: 3, kind: input, shape index: {}]   ;;  %s718_s4 = inlined_call_operand.vmem [shape: f32[1,32], index: 4, kind: input, shape index: {}]   ;;  %s719_s5 = inlined_call_operand.vmem [shape: f32[2,32,256], index: 5, kind: output, shape index: {}]  }
   0x1 LB: > { %s535_s19 = sadd.s32 4294967295, %s602_s18   ;;  %p539_p0 = scmp.ge.s32.totalorder %s602_s18, 1  ;;  %s602_s18 = sphi %s637_s18, %s15_s18  }
   0x2   : > { %p187_p1 = scmp.lt.s32.totalorder %s602_s18, 3 }
   0x4   : > { %p188_p2 = pnand %p539_p0, %p187_p1 }
   0x5   : > { %p215_p3 = scmp.lt.s32.totalorder (!%p188_p2), %s535_s19, 1  ;;  %v249_v12 = vld [vmem:[%s715_s1] sm:$0xff] (!%p188_p2)  ;;  %v250_v13 = vld [vmem:[%s715_s1 + $0x8] sm:$0xff] (!%p188_p2)  ;;  %v604_v15 = vmov (!%p188_p2), 0.0|0.0   ;;  %v251_v16 = vld [vmem:[%s715_s1 + $0x10] sm:$0xff] (!%p188_p2)  ;;  %vm605_vm0 = vmmov (!%p188_p2), 0   ;;  %v258_v20 = vlaneseq (!%p188_p2) }
   0x6   : > { %191 = sbr.rel (%p188_p2) target bundleno = 756 (0x2f4), region = 40  ;;  %v576_v14 = vpack.c.bf16 (!%p188_p2), %v250_v13, %v249_v12  ;;  %575 = vmatprep.subr.bf16.mxu0 (!%p188_p2), %v604_v15  ;;  %v252_v17 = vld [vmem:[%s715_s1 + $0x18] sm:$0xff] (!%p188_p2)  ;;  %v606_v19 = vmov (!%p188_p2), 0.0   ;;  %vm269_vm1 = vcmask (!%p188_p2), 130112   ;;  %vm276_vm2 = vcmask (!%p188_p2), 195712  }
   0x7   : > { %v579_v18 = vpack.c.bf16 (!%p188_p2), %v252_v17, %v251_v16  ;;  %567 = vmatprep.mubr.msk.f32.mxu0 (!%p188_p2), %vm605_vm0, %v606_v19  ;;  %570 = vmatprep.subr.mxu1 (!%p188_p2), %v606_v19  ;;  %v259_v21 = vand.u32 (!%p188_p2), 127, %v258_v20  ;;  %v261_v22 = vshrl.u32 (!%p188_p2), %v258_v20, 7  ;;  %vm283_vm3 = vcmask (!%p188_p2), 261312   ;;  %v359_v45 = vld [vmem:[%s717_s3] sm:$0xf] (!%p188_p2) }
   0x8   : > { %577 = vmatpush3.bf16.msra.mxu0 (!%p188_p2), %v576_v14  ;;  %572 = vmatprep.mubr.msk.f32.mxu1 (!%p188_p2), %vm605_vm0, %v606_v19  ;;  %vm285_vm4 = vcmask (!%p188_p2), 261120   ;;  %vm365_vm5 = vcmask (!%p188_p2), 1043456   ;;  %v253_v46 = vld [vmem:[%s716_s2] sm:$0x1] (!%p188_p2)  ;;  %vm361_vm6 = vcmask (!%p188_p2), 31744  }
   0x9   : > { %578 = vmatprep.subr.bf16.mxu0 (!%p188_p2), %v604_v15  ;;  %v264_v23 = vadd.s32 (!%p188_p2), 4294967288, %v259_v21  ;;  %v271_v25 = vadd.s32 (!%p188_p2), 4294967280, %v259_v21  ;;  %v278_v26 = vadd.s32 (!%p188_p2), 4294967272, %v259_v21  ;;  %v262_v28 = vsub.s32 (!%p188_p2), %v259_v21, %v261_v22  ;;  %571 = vmatpush3.msk.msra.mxu1 (!%p188_p2), %vm365_vm5, %v359_v45  ;;  %v360_v51 = vld [vmem:[%s718_s4] sm:$0x1] (!%p188_p2) }
   0xa   : > { %v447_v58 = vsub.s32 (!%p188_p2), 0, %v261_v22 }
   0xb   : > { %v267_v30 = vsub.s32 (!%p188_p2), %v264_v23, %v261_v22  ;;  %v274_v31 = vsub.s32 (!%p188_p2), %v271_v25, %v261_v22  ;;  %v281_v34 = vsub.s32 (!%p188_p2), %v278_v26, %v261_v22 }
   0xc   : > { %580 = vmatpush3.bf16.msra.mxu0 (!%p188_p2), %v579_v18 }
   0xd   : > { %s721_s19 = smov (!%p215_p3, %s535_s19), 1 }
   0xe   : > { %s550_s20 = sshll.u32 %s721_s19, 6 }
   0xf   : > { %s219_s23 = scalar_lea.vmem %s714_s0, %s550_s20  ;;  %s224_s15 = scalar_lea.vmem %s719_s5, %s550_s20 }
  0x10   : > { %v653_v0 = vld [vmem:[%s219_s23] sm:$0xff]  ;;  %v655_v1 = vld [vmem:[%s219_s23 + $0x8] sm:$0xff]  ;;  %v663_v5 = vld [vmem:[%s219_s23 + $0x10] sm:$0xff] }
  0x11   : > { %v657_v2 = vld [vmem:[%s219_s23 + $0x20] sm:$0xff]  ;;  %v233_v3 = vadd.f32 %v655_v1, %v653_v0  ;;  %v661_v4 = vld [vmem:[%s219_s23 + $0x28] sm:$0xff]  ;;  %v665_v6 = vld [vmem:[%s219_s23 + $0x18] sm:$0xff] }
  0x12   : > { %v239_v7 = vadd.f32 %v661_v4, %v657_v2  ;;  %v669_v8 = vld [vmem:[%s219_s23 + $0x30] sm:$0xff]  ;;  %v671_v9 = vld [vmem:[%s219_s23 + $0x38] sm:$0xff]  ;;  %v236_v10 = vadd.f32 %v665_v6, %v663_v5 }
  0x13   : > { %234 = vadd.xlane.f32.xlu0 %v233_v3  ;;  %v242_v11 = vadd.f32 %v671_v9, %v669_v8 }
  0x14   : > { %240 = vadd.xlane.f32.xlu1 %v239_v7 }
  0x17   : > { %237 = vadd.xlane.f32.xlu0 %v236_v10 }
  0x18   : > { %243 = vadd.xlane.f32.xlu1 %v242_v11 }
  0xa0   : > { %v235_v24 = vpop.xlane.xlu0 %234 }
  0xa1   : > { %v241_v27 = vpop.xlane.xlu1 %240  ;;  %v245_v29 = vmul.f32 0.00390625, %v235_v24 }
  0xa2   : > { %v247_v32 = vmul.f32 0.00390625, %v241_v27 }
  0xa3   : > { %v263_v38 = vrot.slane %v245_v29, %v262_v28 }
  0xa4   : > { %v238_v33 = vpop.xlane.xlu0 %237  ;;  %v275_v40 = vrot.slane %v247_v32, %v274_v31 }
  0xa5   : > { %v246_v35 = vmul.f32 0.00390625, %v238_v33  ;;  %v244_v36 = vpop.xlane.xlu1 %243 }
  0xa6   : > { %v248_v37 = vmul.f32 0.00390625, %v244_v36 }
  0xa7   : > { %v268_v39 = vrot.slane %v246_v35, %v267_v30 }
  0xa8   : > { %v282_v41 = vrot.slane %v248_v37, %v281_v34 }
  0xa9   : > { %v270_v42 = vsel %vm269_vm1, %v268_v39, %v263_v38 }
  0xaa   : > { %v277_v43 = vsel %vm276_vm2, %v275_v40, %v270_v42 }
  0xab   : > { %v284_v44 = vsel %vm283_vm3, %v282_v41, %v277_v43 }
  0xac   : > { %568 = vmatmul.mubr.msk.f32.vlgmr.msra.gmra.mrb[0].mxu0 %vm285_vm4, %v284_v44 }
 0x17f   : > { %v354_v47 = vpop.f32.mrb[0].mxu0 }
 0x180   : > { %v355_v48 = vadd.f32 %v354_v47, %v253_v46  ;;  %v569_v49 = vpop.f32.mrb[1].mxu0 }
 0x182   : > { %v358_v50 = vmax.f32 %v355_v48, 0.0 }
 0x184   : > { %573 = vmatmul.mubr.msk.f32.vlgmr.msra.gmra.mrb[0].mxu1 %vm361_vm6, %v358_v50 }
 0x257   : > { %v435_v52 = vpop.f32.mrb[0].mxu1 }
 0x258   : > { %v436_v53 = vadd.f32 %v435_v52, %v360_v51  ;;  %v574_v54 = vpop.f32.mrb[1].mxu1 }
 0x25a   : > { %v547_v55 = vmul.f32 -1.442695, %v436_v53 }
 0x25c   : > { %592 = vpow2.f32 %v547_v55 }
 0x266   : > { %v593_v56 = vpop.eup %592 }
 0x267   : > { %v442_v57 = vadd.f32 1.0, %v593_v56 }
 0x269   : > { %594 = vrcp.f32 %v442_v57 }
 0x273   : > { %v595_v59 = vpop.eup %594 }
 0x274   : > { %v448_v60 = vrot.slane %v595_v59, %v447_v58 }
 0x276   : > { %454 = vbcast.lane.b32.xlu1 %v448_v60, 264  ;;  %450 = vbcast.lane.b32.xlu0 %v448_v60, 256 }
 0x27a   : > { %458 = vbcast.lane.b32.xlu1 %v448_v60, 272 }
 0x27e   : > { %462 = vbcast.lane.b32.xlu1 %v448_v60, 280 }
 0x2e8   : > { %v455_v61 = vpop.permute.xlu1 %454  ;;  %v451_v62 = vpop.permute.xlu0 %450 }
 0x2e9   : > { %v466_v63 = vmul.f32 %v455_v61, %v663_v5  ;;  %v467_v3 = vmul.f32 %v455_v61, %v665_v6  ;;  %v464_v7 = vmul.f32 %v451_v62, %v653_v0  ;;  %v465_v10 = vmul.f32 %v451_v62, %v655_v1 }
 0x2eb   : > { %474 = vst [vmem:[%s224_s15 + $0x10] sm:$0xff] %v466_v63  ;;  %475 = vst [vmem:[%s224_s15 + $0x18] sm:$0xff] %v467_v3 }
 0x2ec   : > { %472 = vst [vmem:[%s224_s15] sm:$0xff] %v464_v7  ;;  %473 = vst [vmem:[%s224_s15 + $0x8] sm:$0xff] %v465_v10  ;;  %v459_v11 = vpop.permute.xlu1 %458 }
 0x2ed   : > { %v468_v12 = vmul.f32 %v459_v11, %v657_v2  ;;  %v469_v13 = vmul.f32 %v459_v11, %v661_v4 }
 0x2ef   : > { %476 = vst [vmem:[%s224_s15 + $0x20] sm:$0xff] %v468_v12  ;;  %477 = vst [vmem:[%s224_s15 + $0x28] sm:$0xff] %v469_v13 }
 0x2f0   : > { %v463_v14 = vpop.permute.xlu1 %462 }
 0x2f1   : > { %v470_v5 = vmul.f32 %v463_v14, %v669_v8  ;;  %v471_v6 = vmul.f32 %v463_v14, %v671_v9 }
 0x2f3   : > { %478 = vst [vmem:[%s224_s15 + $0x30] sm:$0xff] %v470_v5  ;;  %479 = vst [vmem:[%s224_s15 + $0x38] sm:$0xff] %v471_v6 }
 0x2f4 PF: > { %s15_s18 = sadd.s32 1, %s602_s18  }
 0x2f5   : > { %p12_p4 = scmp.ge.s32.totalorder %s15_s18, 4  }
 0x2f7   :  { %14 = sbr.rel (!%p12_p4) target bundleno = 1 (0x1), region = 70 }

</bundles_post_ra>
